<compile_context>
chip_gen: v7x
topology: tpu7x:2x2x1
jax: 0.10.0
libtpu: 0.0.40
codegen_flags: <defaults>
</compile_context>

<pallas_src>
import jax
import jax.numpy as jnp
from jax.experimental import pallas as pl
from jax.experimental.pallas import tpu as pltpu


def _identity_kernel(x_ref, o_ref):
    # Pure tile copy: VMEM load of the current (tr, C) block, VMEM store.
    o_ref[...] = x_ref[...]


# Candidate lane widths for re-chunking, largest first (all multiples of 128).
_LANE_CANDIDATES = (4096, 2048, 1024, 512, 256, 128)


def identity(x, *, tile_bytes=2 * 1024 * 1024, donate=False):
    """Pallas identity: returns an array equal to x (same shape and dtype)."""
    orig_shape = x.shape

    # Nothing to copy for empty arrays.
    if x.size == 0:
        return x

    n = x.size
    itemsize = jnp.dtype(x.dtype).itemsize

    # --- Choose a lane-dense 2-D view (R, C) --------------------------------
    # Identity has no semantic layout constraint, so any contiguous re-chunk
    # is valid.  Prefer a >=128-multiple lane width (unmasked full-lane vst).
    C = None
    for cand in _LANE_CANDIDATES:
        if n % cand == 0:
            C = cand
            break
    if C is None:
        if x.ndim >= 2:
            C = x.shape[-1]  # keep original last dim; masked stores, still correct
        else:
            C = n            # 1-D / scalar fallback: one (1, n) full block
    x2 = x.reshape(-1, C)    # contiguous reshape: metadata only, no HBM pass
    R = x2.shape[0]

    # --- Row tile from a byte budget (dtype-aware sublane rounding) ---------
    sub = max(8, 32 // itemsize)          # 8 for f32, 16 for bf16, 32 for int8/fp8
    row_bytes = C * itemsize
    tr = max(1, tile_bytes // row_bytes)
    tr = (tr // sub) * sub                # sublane-packed multiple
    if tr < sub:
        tr = sub
    if tr >= R:
        tr = R                            # full-extent block dim: always legal
    grid_r = pl.cdiv(R, tr)               # ragged last block handled by Pallas

    out2 = pl.pallas_call(
        _identity_kernel,
        out_shape=jax.ShapeDtypeStruct((R, C), x2.dtype),
        grid=(grid_r,),
        in_specs=[pl.BlockSpec((tr, C), lambda i: (i, 0))],
        out_specs=pl.BlockSpec((tr, C), lambda i: (i, 0)),
        compiler_params=pltpu.CompilerParams(
            dimension_semantics=("parallel",),
        ),
        cost_estimate=pl.CostEstimate(
            flops=0, transcendentals=0, bytes_accessed=2 * x.nbytes),
        input_output_aliases={0: 0} if donate else {},
    )(x2)

    return out2.reshape(orig_shape)


if __name__ == "__main__":
    key = jax.random.PRNGKey(0)
    k1, k2, k3, k4 = jax.random.split(key, 4)

    # 1) Small shape consistent with the module (Identity accepts any tensor).
    #    n = 2048 -> re-chunked to a single lane-dense (1, 2048) block.
    x = jax.random.normal(k1, (2, 4, 16, 16), dtype=jnp.float32)
    y = jax.block_until_ready(identity(x))
    assert y.shape == x.shape and y.dtype == x.dtype
    assert jnp.array_equal(y, x)

    # 2) Multi-block pipelined path with a ragged last block:
    #    n = 1,310,720 -> (320, 4096) f32, tr = 128 -> grid = cdiv(320,128) = 3.
    x_big = jax.random.normal(k2, (10, 8, 32, 512), dtype=jnp.float32)
    y_big = jax.block_until_ready(identity(x_big))
    assert jnp.array_equal(y_big, x_big)

    # 3) bf16 exercises the dtype-aware sublane rounding (tr multiple of 16);
    #    a smaller byte budget forces the multi-block path: (128, 4096) bf16,
    #    tr = 64 -> grid = 2.
    x_bf16 = jax.random.normal(k3, (4, 8, 128, 128), dtype=jnp.bfloat16)
    y_bf16 = jax.block_until_ready(identity(x_bf16, tile_bytes=512 * 1024))
    assert jnp.array_equal(y_bf16, x_bf16)

    # 4) Indivisible shape: falls back to the original last dim (masked lanes),
    #    single full-extent block (15, 7).
    x_odd = jax.random.normal(k4, (3, 5, 7), dtype=jnp.float32)
    y_odd = jax.block_until_ready(identity(x_odd))
    assert jnp.array_equal(y_odd, x_odd)

    # 5) Aliased (donated) variant compiles and runs; eager caller's x stays valid.
    y_alias = jax.block_until_ready(identity(x, donate=True))
    assert jnp.array_equal(y_alias, x)

    print("KERNEL_OK")
</pallas_src>

<mosaic_0001>
module attributes {stable_mosaic.version = 11 : i64} {
  func.func @_identity_kernel(%arg0: i32, %arg1: memref<1x2048xf32, #tpu.memory_space<vmem>>, %arg2: memref<1x2048xf32, #tpu.memory_space<vmem>>) attributes {dimension_semantics = [#tpu.dimension_semantics<parallel>], iteration_bounds = array<i64: 1>, scalar_prefetch = 0 : i64, scratch_operands = 0 : i64, tpu.core_type = #tpu.core_type<tc>, window_params = [{transform_indices = @transform_0, window_bounds = array<i64: 1, 2048>}, {transform_indices = @transform_1, window_bounds = array<i64: 1, 2048>}]} {
    %c0 = arith.constant 0 : index
    %c0_0 = arith.constant 0 : index
    %0 = vector.load %arg1[%c0, %c0_0] : memref<1x2048xf32, #tpu.memory_space<vmem>>, vector<1x2048xf32>
    %c0_1 = arith.constant 0 : index
    %c0_2 = arith.constant 0 : index
    %1 = vector.load %arg2[%c0_1, %c0_2] : memref<1x2048xf32, #tpu.memory_space<vmem>>, vector<1x2048xf32>
    tpu.vector_store %arg2[%c0_1, %c0_2], %0 {strides = array<i32>} : memref<1x2048xf32, #tpu.memory_space<vmem>>, vector<1x2048xf32>,
    return
  }
  func.func @transform_0(%arg0: i32) -> (i32, i32) {
    %c0_i32 = arith.constant 0 : i32
    %c0_i32_0 = arith.constant 0 : i32
    return %arg0, %c0_i32 : i32, i32
  }
  func.func @transform_1(%arg0: i32) -> (i32, i32) {
    %c0_i32 = arith.constant 0 : i32
    %c0_i32_0 = arith.constant 0 : i32
    return %arg0, %c0_i32 : i32, i32
  }
}

</mosaic_0001>

<bundles_post_ra>
// kernel: tpu_custom_call.1
= control target key start
LH: loop header
LB: loop body
LE: loop exit
PB: predicated region body
PF: predicated region fallthrough
CT: control target
= control target key end

     0   :  { %6 = vsyncpa [#allocation3], 0  ;;  %s126_s0 = inlined_call_operand.hbm [shape: f32[1,2048], index: 0, kind: input, shape index: {}]   ;;  %s127_s1 = inlined_call_operand.hbm [shape: f32[1,2048], index: 1, kind: output, shape index: {}]  }
   0x1   :  { %7 = vsyncpa [#allocation4], 0  ;;  %s90_s6 = smov [#allocation2]   ;;  %s42_s10 = scalar_lea.hbm %s126_s0, 256 }
   0x2   :  { %s14_s7 = sshll.u32 %s90_s6, 4  ;;  %p43_p0 = scmp.ne.s32.totalorder %s126_s0, %s42_s10  ;;  %s15_s7 = int_to_ptr.vmem [resolvable:$true] %s14_s7 }
   0x3   :  { %p46_p1 = scmp.lt.u32.totalorder %s42_s10, %s126_s0 }
   0x5   :  { %p48_p2 = pnand %p46_p1, %p43_p0 }
   0x7   :  { %51 = shalt.err (!%p48_p2)
}
   0x8   :  { %s52_s15 = scalar_lea.vmem %s15_s7, 256  ;;  %p57_p4 = scmp.lt.s32.totalorder %s15_s7, %s15_s7 }
   0x9   :  { %p53_p3 = scmp.ne.s32.totalorder %s15_s7, %s52_s15  ;;  %p58_p5 = scmp.lt.s32.totalorder %s52_s15, %s52_s15 }
   0xb   :  { %p59_p6 = por %p58_p5, %p57_p4 }
   0xd   :  { %p60_p7 = pnand %p59_p6, %p53_p3 }
   0xf   :  { %63 = shalt.err (!%p60_p7)
}
  0x10   :  { %17 = dma.hbm_to_vmem [thread:$0]  %s126_s0, 256, %s15_s7, [#allocation3]  }
  0x11   :  { %86 = dma.done.wait [#allocation3], 256  }
  0x12   :  { %87 = vsyncadd [#allocation3], 4294967040  ;;  %s91_s18 = smov [#allocation5]   ;;  %v21_v0 = vld [vmem:[#allocation2] sm:$0xff]  ;;  %v22_v1 = vld [vmem:[#allocation2 + $0x8] sm:$0xff] }
  0x13   :  { %s31_s19 = sshll.u32 %s91_s18, 4  ;;  %23 = vst [vmem:[#allocation5] sm:$0xff] %v21_v0  ;;  %24 = vst [vmem:[#allocation5 + $0x8] sm:$0xff] %v22_v1  ;;  %s32_s19 = int_to_ptr.vmem [resolvable:$true] %s31_s19 }
  0x14   :  { %s64_s20 = scalar_lea.vmem %s32_s19, 256  ;;  %p69_p9 = scmp.lt.s32.totalorder %s32_s19, %s32_s19 }
  0x15   :  { %p65_p8 = scmp.ne.s32.totalorder %s32_s19, %s64_s20  ;;  %p70_p10 = scmp.lt.s32.totalorder %s64_s20, %s64_s20 }
  0x17   :  { %p71_p11 = por %p70_p10, %p69_p9 }
  0x19   :  { %p72_p12 = pnand %p71_p11, %p65_p8 }
  0x1b   :  { %75 = shalt.err (!%p72_p12)
}
  0x1c   :  { %s76_s0 = scalar_lea.hbm %s127_s1, 256 }
  0x1d   :  { %p77_p13 = scmp.ne.s32.totalorder %s127_s1, %s76_s0  ;;  %p80_p0 = scmp.lt.u32.totalorder %s76_s0, %s127_s1 }
  0x1f   :  { %p82_p1 = pnand %p80_p0, %p77_p13 }
  0x21   :  { %85 = shalt.err (!%p82_p1)
}
  0x22   :  { %34 = dma.vmem_to_hbm [thread:$0]  %s32_s19, 256, %s127_s1, [#allocation4]  }
  0x23   :  { %88 = dma.done.wait [#allocation4], 256  }
  0x24   :  { %89 = vsyncadd [#allocation4], 4294967040 }
  0x25   :  { %38 = vsyncpa [#allocation3], 1 }
  0x26   :  { %39 = vsyncpa [#allocation4], 1 }

</bundles_post_ra>
